<compile_context>
chip_gen: v7x
topology: tpu7x:2x2x1
jax: 0.10.0
libtpu: 0.0.40
codegen_flags: <defaults>
</compile_context>

<pallas_src>
import functools

import jax
import jax.numpy as jnp
from jax.experimental import pallas as pl
from jax.experimental.pallas import tpu as pltpu


def find_kernel(x_ref, w_big_ref, b_big_ref, b_att_ref, out_ref, *, d_map, d_pad):
    # x: (D_img, t) pixels-on-lanes block.  W_big: (D_big, D_img) with the wordvec-gated
    # 1x1 conv in rows [:d_map] and the folded attention row at row d_pad.
    y = jnp.dot(w_big_ref[...], x_ref[...],
                preferred_element_type=jnp.float32) + b_big_ref[...]     # (D_big, t) f32

    d_big = y.shape[0]
    # Per-pixel ||mult||^2: masked ones-row MXU reduce over the mult rows only
    # (the s row and padding rows are excluded by the mask / are exactly zero).
    col = jax.lax.broadcasted_iota(jnp.int32, (1, d_big), 1)
    ones_mask = jnp.where(col < d_map, 1.0, 0.0).astype(jnp.float32)
    n2 = jnp.dot(ones_mask, y * y, preferred_element_type=jnp.float32)   # (1, t)

    # Pre-normalization attention logit: row d_pad of y (sublane-aligned static slice).
    s = y[d_pad:d_pad + 1, :]                                            # (1, t)

    # out = s / max(||mult||, 1e-12) + b_att  ==  s * rsqrt(max(n2, 1e-24)) + b_att
    inv = jax.lax.rsqrt(jnp.maximum(n2, 1e-24))
    out_ref[...] = (s * inv + b_att_ref[0, 0]).astype(out_ref.dtype)


def find_module_forward(wordvec, image_feat, params, *, tile_hw=512):
    N, D_img, H, W = image_feat.shape
    HW = H * W
    D_map = params["w_txt"].shape[1]

    # ---- grid-invariant wordvec path folded into the conv weights (exact) ----
    wv = (wordvec.reshape(1, -1).astype(jnp.float32)
          @ params["w_txt"].astype(jnp.float32)
          + params["b_txt"].astype(jnp.float32))                        # (1, D_map)
    w_eff = (params["w_img"].astype(jnp.float32) * wv).T                # (D_map, D_img)
    b_eff = (params["b_img"].astype(jnp.float32) * wv).reshape(D_map, 1)
    w_att_t = params["w_att"].reshape(1, D_map).astype(jnp.float32)     # (1, D_map)
    b_att = params["b_att"].reshape(1, 1).astype(jnp.float32)           # SMEM scalar

    # ---- fold the attention projection into the same matmul (exact) ----
    #   s = w_att^T @ mult = (w_att^T @ W_eff) @ x + (w_att^T @ b_eff)
    w_s = w_att_t @ w_eff                                               # (1, D_img)
    s_bias = w_att_t @ b_eff                                            # (1, 1)

    d_pad = ((D_map + 7) // 8) * 8       # sublane-aligned row index for the s slice
    d_big = d_pad + 8                    # keep stacked weight rows a multiple of 8
    w_big = jnp.zeros((d_big, D_img), jnp.float32)
    w_big = w_big.at[:D_map].set(w_eff).at[d_pad].set(w_s[0])
    b_big = jnp.zeros((d_big, 1), jnp.float32)
    b_big = b_big.at[:D_map].set(b_eff).at[d_pad].set(s_bias[0])

    # bf16 inputs: run the MXU pass bf16 x bf16 (n2 / rsqrt stay f32 via f32 accumulate).
    if image_feat.dtype == jnp.bfloat16:
        w_big = w_big.astype(jnp.bfloat16)

    # NCHW stays NCHW in its native dtype: only a free (contiguous) reshape, no HBM
    # transpose or astype passes before the kernel.
    x = image_feat.reshape(N, D_img, HW)

    # ---- pixel-tile sizing: lane-aligned, conservative VMEM budget (v5e-safe) ----
    bytes_x = x.dtype.itemsize

    def vmem_bytes(t):
        return (2 * D_img * t * bytes_x            # double-buffered x blocks
                + 2 * t * 4                        # double-buffered output blocks
                + 2 * d_big * (D_img + 1) * 4      # double-buffered weights / bias
                + 2 * d_big * t * 4)               # y / y*y live slabs (upper bound)

    t = min(tile_hw, HW)
    if t < HW:
        t = max(128, (t // 128) * 128)
    budget = 12 * 1024 * 1024    # headroom under v5e's 16 MiB default scoped-VMEM limit
    while t > 128 and vmem_bytes(t) > budget:
        nt = max(128, ((t // 2) // 128) * 128)
        if nt == t:
            break
        t = nt
    num_t = pl.cdiv(HW, t)
    # v7x megacore: make sure the "parallel" grid has >= 2 steps to feed both cores.
    if N * num_t < 2 and HW > 128:
        t = max(128, ((pl.cdiv(HW, 2) + 127) // 128) * 128)
        num_t = pl.cdiv(HW, t)

    full2d = lambda shape: pl.BlockSpec(shape, lambda n, i: (0, 0))

    att_flat = pl.pallas_call(
        functools.partial(find_kernel, d_map=D_map, d_pad=d_pad),
        out_shape=jax.ShapeDtypeStruct((N, 1, HW), jnp.float32),
        grid_spec=pltpu.PrefetchScalarGridSpec(
            num_scalar_prefetch=0,
            grid=(N, num_t),
            in_specs=[
                pl.BlockSpec((None, D_img, t), lambda n, i: (n, 0, i)),  # image block
                full2d((d_big, D_img)),                                  # W_big
                full2d((d_big, 1)),                                      # b_big
                pl.BlockSpec(memory_space=pltpu.MemorySpace.SMEM),       # b_att scalar
            ],
            out_specs=pl.BlockSpec((None, 1, t), lambda n, i: (n, 0, i)),
        ),
        compiler_params=pltpu.CompilerParams(
            dimension_semantics=("parallel", "parallel")),
    )(x, w_big, b_big, b_att)

    # (N, 1, HW) -> NCHW attention grid (free reshape).
    return att_flat.reshape(N, 1, H, W)


def find_module_ref(wordvec, image_feat, params):
    """Pure-JAX reference matching the PyTorch forward."""
    wv = wordvec.reshape(1, -1) @ params["w_txt"] + params["b_txt"]      # (1, D_map)
    x = jnp.transpose(image_feat, (0, 2, 3, 1))                          # NHWC
    img_mapped = x @ params["w_img"] + params["b_img"]                   # (N,H,W,D_map)
    mult = img_mapped * wv[0]
    norm = jnp.sqrt(jnp.sum(mult * mult, axis=-1, keepdims=True))
    normalized = mult / jnp.maximum(norm, 1e-12)
    att = normalized @ params["w_att"] + params["b_att"]                 # (N,H,W,1)
    return att.transpose(0, 3, 1, 2)


if __name__ == "__main__":
    # Small shapes consistent with the module
    N, D_img, D_txt, D_map, H, W = 2, 8, 16, 32, 16, 16

    key = jax.random.PRNGKey(0)
    k_wv, k_img, k_wt, k_bt, k_wi, k_bi, k_wa, k_ba = jax.random.split(key, 8)

    wordvec = jax.random.normal(k_wv, (1, D_txt), jnp.float32)
    image_feat = jax.random.normal(k_img, (N, D_img, H, W), jnp.float32)

    # Synthetic parameters (Linear D_txt->D_map, Conv D_img->D_map 1x1, Conv D_map->1 1x1),
    # stored transposed for right-multiplication in the reference.
    params = {
        "w_txt": jax.random.normal(k_wt, (D_txt, D_map), jnp.float32) * 0.1,
        "b_txt": jax.random.normal(k_bt, (1, D_map), jnp.float32) * 0.1,
        "w_img": jax.random.normal(k_wi, (D_img, D_map), jnp.float32) * 0.1,
        "b_img": jax.random.normal(k_bi, (1, D_map), jnp.float32) * 0.1,
        "w_att": jax.random.normal(k_wa, (D_map, 1), jnp.float32) * 0.1,
        "b_att": jax.random.normal(k_ba, (1, 1), jnp.float32) * 0.1,
    }

    out = find_module_forward(wordvec, image_feat, params)
    out = jax.block_until_ready(out)

    ref = find_module_ref(wordvec, image_feat, params)
    assert out.shape == (N, 1, H, W)
    assert jnp.allclose(out, ref, atol=1e-5, rtol=1e-5)

    print("KERNEL_OK")
</pallas_src>

<mosaic_0001>
module attributes {stable_mosaic.version = 11 : i64} {
  func.func @find_kernel(%arg0: i32, %arg1: i32, %arg2: memref<1x8x256xf32, #tpu.memory_space<vmem>>, %arg3: memref<40x8xf32, #tpu.memory_space<vmem>>, %arg4: memref<40x1xf32, #tpu.memory_space<vmem>>, %arg5: memref<1x1xf32, #tpu.memory_space<smem>>, %arg6: memref<1x1x256xf32, #tpu.memory_space<vmem>>) attributes {dimension_semantics = [#tpu.dimension_semantics<parallel>, #tpu.dimension_semantics<parallel>], iteration_bounds = array<i64: 2, 1>, scalar_prefetch = 0 : i64, scratch_operands = 0 : i64, tpu.core_type = #tpu.core_type<tc>, window_params = [{transform_indices = @transform_0, window_bounds = array<i64: 1, 8, 256>}, {pipeline_mode = #tpu.pipeline_mode<synchronous>, transform_indices = @transform_1, window_bounds = array<i64: 40, 8>}, {pipeline_mode = #tpu.pipeline_mode<synchronous>, transform_indices = @transform_2, window_bounds = array<i64: 40, 1>}, {transform_indices = @transform_3, window_bounds = array<i64: 1, 1>}, {transform_indices = @transform_4, window_bounds = array<i64: 1, 1, 256>}]} {
    %c0 = arith.constant 0 : index
    %c0_0 = arith.constant 0 : index
    %0 = vector.load %arg3[%c0, %c0_0] : memref<40x8xf32, #tpu.memory_space<vmem>>, vector<40x8xf32>
    %c0_1 = arith.constant 0 : index
    %c0_2 = arith.constant 0 : index
    %c0_3 = arith.constant 0 : index
    %1 = vector.load %arg2[%c0_1, %c0_2, %c0_3] : memref<1x8x256xf32, #tpu.memory_space<vmem>>, vector<1x8x256xf32>
    %2 = vector.shape_cast %1 : vector<1x8x256xf32> to vector<8x256xf32>
    %cst = arith.constant dense<0.000000e+00> : vector<40x256xf32>
    %3 = tpu.matmul %0, %2, %cst {dimension_numbers = #tpu.dot_dimension_numbers<[1], [0], [0], [1], [0, 0, 1, 1], [], []>} : vector<40x8xf32>, vector<8x256xf32>, vector<40x256xf32> -> vector<40x256xf32>
    %c0_4 = arith.constant 0 : index
    %c0_5 = arith.constant 0 : index
    %4 = vector.load %arg4[%c0_4, %c0_5] : memref<40x1xf32, #tpu.memory_space<vmem>>, vector<40x1xf32>
    %5 = vector.broadcast %4 : vector<40x1xf32> to vector<40x256xf32>
    %6 = arith.addf %3, %5 : vector<40x256xf32>
    %7 = tpu.iota {dimensions = array<i32: 1>} : vector<1x40xi32>
    %c32_i32 = arith.constant 32 : i32
    %8 = vector.broadcast %c32_i32 : i32 to vector<1x40xi32>
    %9 = arith.cmpi slt, %7, %8 : vector<1x40xi32>
    %cst_6 = arith.constant 1.000000e+00 : f32
    %cst_7 = arith.constant 0.000000e+00 : f32
    %10 = vector.broadcast %cst_6 : f32 to vector<1x40xf32>
    %11 = vector.broadcast %cst_7 : f32 to vector<1x40xf32>
    %12 = arith.select %9, %10, %11 : vector<1x40xi1>, vector<1x40xf32>
    %13 = arith.mulf %6, %6 : vector<40x256xf32>
    %cst_8 = arith.constant dense<0.000000e+00> : vector<1x256xf32>
    %14 = tpu.matmul %12, %13, %cst_8 {dimension_numbers = #tpu.dot_dimension_numbers<[1], [0], [0], [1], [0, 0, 1, 1], [], []>} : vector<1x40xf32>, vector<40x256xf32>, vector<1x256xf32> -> vector<1x256xf32>
    %15 = vector.extract_strided_slice %6 {offsets = [32, 0], sizes = [1, 256], strides = [1, 1]} : vector<40x256xf32> to vector<1x256xf32>
    %cst_9 = arith.constant 1.000000e-24 : f32
    %16 = vector.broadcast %cst_9 : f32 to vector<1x256xf32>
    %17 = arith.maximumf %14, %16 : vector<1x256xf32>
    %18 = math.rsqrt %17 : vector<1x256xf32>
    %19 = arith.mulf %15, %18 : vector<1x256xf32>
    %c0_10 = arith.constant 0 : index
    %c0_11 = arith.constant 0 : index
    %20 = memref.load %arg5[%c0_10, %c0_11] : memref<1x1xf32, #tpu.memory_space<smem>>
    %21 = vector.broadcast %20 : f32 to vector<1x256xf32>
    %22 = arith.addf %19, %21 : vector<1x256xf32>
    %c0_12 = arith.constant 0 : index
    %c0_13 = arith.constant 0 : index
    %c0_14 = arith.constant 0 : index
    %23 = vector.load %arg6[%c0_12, %c0_13, %c0_14] : memref<1x1x256xf32, #tpu.memory_space<vmem>>, vector<1x1x256xf32>
    %24 = vector.shape_cast %23 : vector<1x1x256xf32> to vector<1x256xf32>
    %25 = vector.shape_cast %22 : vector<1x256xf32> to vector<1x1x256xf32>
    tpu.vector_store %arg6[%c0_12, %c0_13, %c0_14], %25 {strides = array<i32>} : memref<1x1x256xf32, #tpu.memory_space<vmem>>, vector<1x1x256xf32>,
    return
  }
  func.func @transform_0(%arg0: i32, %arg1: i32) -> (i32, i32, i32) {
    %c0_i32 = arith.constant 0 : i32
    %c0_i32_0 = arith.constant 0 : i32
    return %arg0, %c0_i32, %arg1 : i32, i32, i32
  }
  func.func @transform_1(%arg0: i32, %arg1: i32) -> (i32, i32) {
    %c0_i32 = arith.constant 0 : i32
    %c0_i32_0 = arith.constant 0 : i32
    %c0_i32_1 = arith.constant 0 : i32
    return %c0_i32, %c0_i32_0 : i32, i32
  }
  func.func @transform_2(%arg0: i32, %arg1: i32) -> (i32, i32) {
    %c0_i32 = arith.constant 0 : i32
    %c0_i32_0 = arith.constant 0 : i32
    %c0_i32_1 = arith.constant 0 : i32
    return %c0_i32, %c0_i32_0 : i32, i32
  }
  func.func @transform_3(%arg0: i32, %arg1: i32) -> (i32, i32) {
    %c0_i32 = arith.constant 0 : i32
    %c0_i32_0 = arith.constant 0 : i32
    %c0_i32_1 = arith.constant 0 : i32
    return %c0_i32, %c0_i32_0 : i32, i32
  }
  func.func @transform_4(%arg0: i32, %arg1: i32) -> (i32, i32, i32) {
    %c0_i32 = arith.constant 0 : i32
    %c0_i32_0 = arith.constant 0 : i32
    return %arg0, %c0_i32, %arg1 : i32, i32, i32
  }
}

</mosaic_0001>

<bundles_post_ra>
// kernel: tpu_custom_call.1
= control target key start
LH: loop header
LB: loop body
LE: loop exit
PB: predicated region body
PF: predicated region fallthrough
CT: control target
= control target key end

     0   :  { %s950_s0 = inlined_call_operand.vmem [shape: f32[2,8,256], index: 0, kind: input, shape index: {}]   ;;  %s951_s1 = inlined_call_operand.vmem [shape: f32[40,8], index: 1, kind: input, shape index: {}]   ;;  %s952_s2 = inlined_call_operand.vmem [shape: f32[40,1], index: 2, kind: input, shape index: {}]   ;;  %s953_s3 = inlined_call_operand.<no memory space> [shape: f32[1,1], index: 3, kind: input, shape index: {}]   ;;  %s954_s4 = inlined_call_operand.hbm [shape: f32[2,1,256], index: 4, kind: output, shape index: {}]  }
   0x1   :  { %9 = sst [smem:[#allocation2]] %s953_s3 }
   0x2   :  { %10 = vsyncpa [#allocation4], 0 }
   0x3   :  { %12 = vsyncpa [#allocation4 + $0x1], 0  ;;  %s796_s17 = smov 0   ;;  %s798_s18 = smov 0  }
   0x4   :  { %s800_s19 = smov 0   ;;  %s802_s20 = smov 0  }
   0x5   :  { %s804_s21 = smov 0   ;;  %s806_s22 = smov 0  }
   0x6 LB: > { %s591_s3 = sadd.s32 4294967295, %s762_s22   ;;  %s592_s23 = sadd.s32 4294967294, %s762_s22   ;;  %s762_s22 = sphi %s806_s22, %s18_s22   ;;  %s758_s21 = sphi %s804_s21, %s961_s21   ;;  %s754_s20 = sphi %s802_s20, %s960_s20   ;;  %s750_s19 = sphi %s800_s19, %s959_s19   ;;  %s746_s18 = sphi %s798_s18, %s958_s18   ;;  %s742_s17 = sphi %s796_s17, %s957_s17  }
   0x7   : > { %s30_s24 = sadd.s32 1, %s758_s21  ;;  %s130_s25 = sadd.s32 1, %s750_s19 }
   0x8   : > { %p32_p0 = scmp.ge.s32.totalorder %s30_s24, 2  ;;  %p140_p1 = scmp.ne.s32.totalorder %s750_s19, %s746_s18 }
   0x9   : > { %p141_p2 = scmp.eq.s32.totalorder %s591_s3, 1  ;;  %p146_p3 = scmp.ne.s32.totalorder %s746_s18, %s742_s17 }
   0xa   : > { %s963_s24 = smov (%p32_p0, %s30_s24), 0  ;;  %p147_p5 = scmp.eq.s32.totalorder %s592_s23, 1 }
   0xb   : > { %p836_p4 = por %p141_p2, %p140_p1  ;;  %s125_s27 = ssub.s32 %s758_s21, %s963_s24 }
   0xc   : > { %p595_p6 = scmp.ge.s32.totalorder %s762_s22, 1  ;;  %p128_p7 = scmp.eq.s32.totalorder %s125_s27, 0 }
   0xd   : > { %p843_p8 = por %p147_p5, %p146_p3  ;;  %p187_p9 = scmp.lt.s32.totalorder %s762_s22, 3 }
   0xe   : > { %s849_s29 = scalar_select %p128_p7, %s750_s19, %s130_s25  }
   0xf   : > { %p188_p10 = pnand %p595_p6, %p187_p9 }
  0x10   : > { %p218_p11 = scmp.lt.s32.totalorder (!%p188_p10), %s754_s20, 1  ;;  %v764_v0 = vmov (!%p188_p10), 0.0   ;;  %v235_v1 = vld [vmem:[%s952_s2] sm:$0xff] (!%p188_p10)  ;;  %v765_v2 = vmov (!%p188_p10), 0   ;;  %v237_v3 = vld [vmem:[%s952_s2 + $0x10] sm:$0xff] (!%p188_p10)  ;;  %v236_v4 = vld [vmem:[%s952_s2 + $0x8] sm:$0xff] (!%p188_p10)  ;;  %v376_v37 = vlaneseq (!%p188_p10) }
  0x11   : > { %191 = sbr.rel (%p188_p10) target bundleno = 518 (0x206), region = 36  ;;  %345 = vmatprep.mubr.f32.mxu0 (!%p188_p10), %v764_v0  ;;  %458 = vmatprep.mubr.f32.mxu1 (!%p188_p10), %v764_v0  ;;  %v238_v5 = vld [vmem:[%s952_s2 + $0x18] sm:$0xff] (!%p188_p10)  ;;  %v228_v8 = vld [vmem:[%s951_s1] sm:$0xff] (!%p188_p10)  ;;  %vm265_vm0 = vcmask (!%p188_p10), 64512   ;;  %v229_v10 = vld [vmem:[%s951_s1 + $0x8] sm:$0xff] (!%p188_p10)  ;;  %vm390_vm2 = vcmask (!%p188_p10), 326656  }
  0x12   : > { %678 = vset.pattern.permute.xlu0 (!%p188_p10), %v765_v2  ;;  %679 = vset.pattern.permute.xlu1 (!%p188_p10), %v765_v2  ;;  %v239_v9 = vld [vmem:[%s952_s2 + $0x20] sm:$0xff] (!%p188_p10)  ;;  %v230_v11 = vld [vmem:[%s951_s1 + $0x10] sm:$0xff] (!%p188_p10)  ;;  %v231_v12 = vld [vmem:[%s951_s1 + $0x18] sm:$0xff] (!%p188_p10)  ;;  %v377_v46 = vand.u32 (!%p188_p10), 127, %v376_v37  ;;  %s471_s12 = sld [smem:[#allocation2]] (!%p188_p10)  ;;  %s214_s13 = sand.u32 (!%p188_p10), 1, %s746_s18  }
  0x13   : > { %242 = vperm.xlu0 (!%p188_p10), %678, %v235_v1   ;;  %252 = vperm.xlu1 (!%p188_p10), %679, %v237_v3   ;;  %v232_v13 = vld [vmem:[%s951_s1 + $0x20] sm:$0xff] (!%p188_p10)  ;;  %v766_v60 = vmov (!%p188_p10), 1966171168   ;;  %v482_v2 = vshrl.u32 (!%p188_p10), %v376_v37, 7  ;;  %s611_s15 = sshll.u32 (!%p188_p10), %s754_s20, 5  ;;  %vm495_vm3 = vcmp.lt.s32.totalorder (!%p188_p10), %v376_v37, 256 }
  0x14   : > { %vm378_vm1 = vcmp.lt.s32.totalorder (!%p188_p10), %v377_v46, 32  ;;  %v479_v61 = vunpack.c.l.s4 (!%p188_p10), %v766_v60  ;;  %s903_s27 = scalar_lea.hbm (!%p188_p10), %s954_s4, %s611_s15  ;;  %s499_s30 = scalar_lea.sflag (!%p188_p10), [#allocation4], %s214_s13 }
  0x15   : > { %v379_v55 = vsel (!%p188_p10), %vm378_vm1, 1.0, %v764_v0 }
  0x16   : > { %v480_v1 = vunpack.c.0.s8 (!%p188_p10), %v479_v61 }
  0x17   : > { %247 = vperm.xlu0 (!%p188_p10), %678, %v236_v4   ;;  %257 = vperm.xlu1 (!%p188_p10), %679, %v238_v5  }
  0x18   : > { %s219_s6 = scalar_select %p218_p11, %s754_s20, 1  ;;  %v472_v63 = vstv %s471_s12 }
  0x19   : > { %s767_s20 = smov [#allocation3]  }
  0x1a   : > { %s610_s9 = sshll.u32 %s219_s6, 4  ;;  %s688_s6 = sshll.u32 %s767_s20, 4  ;;  %s689_s6 = int_to_ptr.vmem [resolvable:$false] %s688_s6 }
  0x1b   : > { %s225_s14 = scalar_lea.vmem %s950_s0, %s610_s9  ;;  %262 = vperm.xlu0 %678, %v239_v9   ;;  %s690_s7 = scalar_lea.vmem %s689_s6, 64 }
  0x1c   : > { %v234_v6 = vld [vmem:[%s225_s14 + $0x8] sm:$0xff]  ;;  %v233_v7 = vld [vmem:[%s225_s14] sm:$0xff]  ;;  %s596_s14 = sshll.u32 %s214_s13, 1 }
  0x1d   : > { %281 = vmatprep.subr.mxu0 %v234_v6  ;;  %s216_s16 = scalar_lea.vmem [#allocation3], %s596_s14 }
  0x1e   : > { %282 = vmatpush1.msra.mxu0 %v233_v7  ;;  %v483_v7 = vsub.s32 %v480_v1, %v482_v2  ;;  %s515_s3 = sshll.u32 %s216_s16, 4  ;;  %s905_s3 = int_to_ptr.vmem [resolvable:$true] %s515_s3 }
  0x1f   : > { %599 = vmatmul.mubr.msk.f32.vlgmr.msra.gmra.mrb[0].mxu0 %vm265_vm0, %v228_v8  ;;  %s684_s5 = scalar_lea.vmem %s905_s3, 32  ;;  %p691_p1 = scmp.lt.s32.totalorder %s905_s3, %s689_s6 }
  0x20   : > { %351 = vmatprep.mubr.f32.mxu0 %v764_v0  ;;  %p685_p12 = scmp.ne.s32.totalorder %s905_s3, %s684_s5  ;;  %p692_p2 = scmp.lt.s32.totalorder %s690_s7, %s684_s5 }
  0x22   : > { %p686_p13 = pnand %p685_p12, %p836_p4  ;;  %p693_p3 = por %p692_p2, %p691_p1 }
  0x23   : > { %600 = vmatmul.mubr.msk.f32.gmra.mrb[2].mxu0 %vm265_vm0, %v229_v10 }
  0x24   : > { %357 = vmatprep.mubr.f32.mxu0 %v764_v0  ;;  %p687_p0 = pneg %p686_p13 }
  0x26   : > { %p694_p5 = pnand %p693_p3, %p687_p0 }
  0x27   : > { %601 = vmatmul.mubr.msk.f32.gmra.mrb[4].mxu0 %vm265_vm0, %v230_v11 }
  0x28   : > { %363 = vmatprep.mubr.f32.mxu0 %v764_v0 }
  0x2b   : > { %602 = vmatmul.mubr.msk.f32.gmra.mrb[6].mxu0 %vm265_vm0, %v231_v12 }
  0x2c   : > { %369 = vmatprep.mubr.f32.mxu0 %v764_v0 }
  0x2f   : > { %603 = vmatmul.mubr.msk.f32.gmra.mrb[8].mxu0 %vm265_vm0, %v232_v13 }
  0x92   : > { %v243_v14 = vpop.permute.xlu0 %242  ;;  %v253_v23 = vpop.permute.xlu1 %252 }
  0x96   : > { %v248_v18 = vpop.permute.xlu0 %247  ;;  %v258_v34 = vpop.permute.xlu1 %257 }
  0x9a   : > { %v263_v47 = vpop.permute.xlu0 %262 }
  0xf2   : > { %v347_v15 = vpop.f32.mrb[0].mxu0 }
  0xf3   : > { %v349_v16 = vpop.f32.mrb[1].mxu0  ;;  %v348_v17 = vadd.f32 %v347_v15, %v243_v14 }
  0xf4   : > { %v350_v19 = vadd.f32 %v349_v16, %v243_v14 }
  0xf5   : > { %v380_v25 = vmul.f32 %v348_v17, %v348_v17 }
  0xf6   : > { %v353_v20 = vpop.f32.mrb[2].mxu0  ;;  %v381_v27 = vmul.f32 %v350_v19, %v350_v19 }
  0xf7   : > { %v354_v21 = vadd.f32 %v353_v20, %v248_v18  ;;  %v355_v22 = vpop.f32.mrb[3].mxu0 }
  0xf8   : > { %v356_v24 = vadd.f32 %v355_v22, %v248_v18 }
  0xf9   : > { %v382_v26 = vmul.f32 %v354_v21, %v354_v21 }
  0xfa   : > { %v383_v28 = vmul.f32 %v356_v24, %v356_v24  ;;  %v359_v29 = vpop.f32.mrb[4].mxu0 }
  0xfb   : > { %v361_v30 = vpop.f32.mrb[5].mxu0  ;;  %v614_v31 = vpack.c.bf16 %v382_v26, %v380_v25  ;;  %v360_v33 = vadd.f32 %v359_v29, %v253_v23 }
  0xfc   : > { %v612_v32 = vpack.c.bf16 %v383_v28, %v381_v27  ;;  %v362_v35 = vadd.f32 %v361_v30, %v253_v23 }
  0xfd   : > { %v384_v41 = vmul.f32 %v360_v33, %v360_v33 }
  0xfe   : > { %v365_v36 = vpop.f32.mrb[6].mxu0  ;;  %613 = vmatprep.subr.bf16.mxu1 %v612_v32  ;;  %v385_v43 = vmul.f32 %v362_v35, %v362_v35 }
  0xff   : > { %v366_v38 = vadd.f32 %v365_v36, %v258_v34  ;;  %v367_v39 = vpop.f32.mrb[7].mxu0  ;;  %615 = vmatpush1.bf16.msra.mxu1 %v614_v31 }
 0x100   : > { %v368_v40 = vadd.f32 %v367_v39, %v258_v34 }
 0x101   : > { %v386_v42 = vmul.f32 %v366_v38, %v366_v38 }
 0x102   : > { %v387_v44 = vmul.f32 %v368_v40, %v368_v40  ;;  %v371_v45 = vpop.f32.mrb[8].mxu0 }
 0x103   : > { %v618_v48 = vpack.c.bf16 %v386_v42, %v384_v41  ;;  %v373_v49 = vpop.f32.mrb[9].mxu0  ;;  %v372_v52 = vadd.f32 %v371_v45, %v263_v47 }
 0x104   : > { %v616_v50 = vpack.c.bf16 %v387_v44, %v385_v43  ;;  %v374_v51 = vadd.f32 %v373_v49, %v263_v47 }
 0x105   : > { %v388_v54 = vmul.f32 %v372_v52, %v372_v52 }
 0x106   : > { %v389_v53 = vmul.f32 %v374_v51, %v374_v51  ;;  %617 = vmatprep.subr.bf16.mxu1 %v616_v50 }
 0x107   : > { %619 = vmatpush1.bf16.msra.mxu1 %v618_v48 }
 0x108   : > { %402 = vmatprep.subr.mxu1 %v389_v53 }
 0x10b   : > { %403 = vmatpush1.msra.mxu1 %v388_v54 }
 0x10c   : > { %604 = vmatmul.mubr.msk.f32.vlgmr.msra.gmra.mrb[0].mxu1 %vm390_vm2, %v379_v55 }
 0x1df   : > { %v460_v56 = vpop.f32.mrb[0].mxu1 }
 0x1e0   : > { %v465_v57 = vmax.f32 %v460_v56, 1e-24  ;;  %v462_v58 = vpop.f32.mrb[1].mxu1 }
 0x1e1   : > { %v466_v59 = vmax.f32 %v462_v58, 1e-24 }
 0x1e2   : > { %680 = vrsqrt.f32 %v465_v57 }
 0x1e3   : > { %682 = vrsqrt.f32 %v466_v59 }
 0x1ec   : > { %v681_v62 = vpop.eup %680 }
 0x1ed   : > { %v683_v3 = vpop.eup %682  ;;  %v469_v0 = vmul.f32 %v681_v62, %v372_v52 }
 0x1ee   : > { %v470_v4 = vmul.f32 %v683_v3, %v374_v51 }
 0x1ef   : > { %v473_v5 = vadd.f32 %v472_v63, %v469_v0 }
 0x1f0   : > { %v474_v6 = vadd.f32 %v472_v63, %v470_v4 }
 0x1f2   : > { %v477_v8 = vcombine.low %v473_v5, %v474_v6 }
 0x1f4   : > { %v484_v9 = vrot.slane %v477_v8, %v483_v7 }
 0x1f6   : > { %v491_v10 = vrot.slane %v484_v9, %v483_v7 }
 0x1f8   : > { %497 = vst.msk [vmem:[%s216_s16] sm:$0x3] %vm495_vm3, %v491_v10 }
 0x1f9   : > { %697 = shalt.err (!%p694_p5)
}
 0x1fa   : > { %s698_s8 = scalar_lea.hbm %s903_s27, 32  ;;  %s702_s11 = scalar_lea.hbm %s954_s4, 64 }
 0x1fb   : > { %p699_p6 = scmp.ne.s32.totalorder %s903_s27, %s698_s8  ;;  %p703_p10 = scmp.lt.u32.totalorder %s903_s27, %s954_s4 }
 0x1fc   : > { %p704_p11 = scmp.lt.u32.totalorder %s702_s11, %s698_s8  ;;  %p706_p13 = scmp.lt.u32.totalorder %s698_s8, %s903_s27 }
 0x1fd   : > { %p700_p7 = pnand %p699_p6, %p836_p4 }
 0x1fe   : > { %p705_p12 = por %p704_p11, %p703_p10 }
 0x1ff   : > { %p701_p9 = pneg %p700_p7 }
 0x200   : > { %p707_p0 = por %p706_p13, %p705_p12 }
 0x202   : > { %p708_p1 = pnand %p707_p0, %p701_p9 }
 0x204   : > { %711 = shalt.err (!%p708_p1)
}
 0x205   : > { %620 = dma.vmem_to_hbm [thread:$0]  (%p836_p4), %s905_s3, 32, %s903_s27, %s499_s30  }
 0x206 PF: > { %p626_p2 = scmp.ge.s32.totalorder %s762_s22, 2  ;;  %s527_s14 = sand.u32 1, %s742_s17  }
 0x207   : > { %s528_s15 = scalar_lea.sflag [#allocation4], %s527_s14 }
 0x208   : > { %p623_p3 = pnand %p626_p2, %p843_p8 }
 0x20a   : > { %737 = dma.done.wait (!%p623_p3), %s528_s15, 32  }
 0x20b   : > { %739 = vsyncadd (!%p623_p3), %s528_s15, 4294967264  ;;  %s18_s22 = sadd.s32 1, %s762_s22   ;;  %s957_s17 = smov %s746_s18 }
 0x20c   : > { %p15_p5 = scmp.ge.s32.totalorder %s18_s22, 4   ;;  %s958_s18 = smov %s750_s19 }
 0x20d   : > { %s959_s19 = smov %s849_s29  ;;  %s960_s20 = smov %s758_s21 }
 0x20e   : > { %s961_s21 = smov %s963_s24  ;;  %17 = sbr.rel (!%p15_p5) target bundleno = 6 (0x6), region = 71 }
 0x215   :  { %533 = vsyncpa [#allocation4], 1 }
 0x216   :  { %535 = vsyncpa [#allocation4 + $0x1], 1 }

</bundles_post_ra>
